<compile_context>
chip_gen: v5e
topology: v5e:2x2
jax: 0.10.0
libtpu: 0.0.40
codegen_flags: <defaults>
</compile_context>

<pallas_src>
import math
from functools import partial

import jax
import jax.numpy as jnp
from jax.experimental import pallas as pl
from jax.experimental.pallas import tpu as pltpu

LANE = 128          # TPU lane width; internal hidden dims are padded to this.
NEG_SLOPE = 0.4     # LeakyReLU slope from the PyTorch module.
N_LAYERS = 4        # Encoder has exactly 4 Linear layers.


def _leaky_relu(h, negative_slope=NEG_SLOPE):
    return jnp.where(h >= 0, h, negative_slope * h)


def _round_up(x, m):
    return (x + m - 1) // m * m


def encoder_kernel(x_ref, w1_ref, wmid_ref, w4_ref, bmid_ref, b4_ref, o_ref):
    """Fused (Linear + LeakyReLU(0.4)) x3 -> Linear -> Sigmoid.

    x_ref:    (TB, in_dim)     batch tile at logical (unpadded) width
    w1_ref:   (in_dim, 128)    layer-1 weight, out-dim zero-padded to 128
    wmid_ref: (2, 128, 128)    layers 2-3 weights, zero-padded to 128x128
    w4_ref:   (128, out_dim)   layer-4 weight, in-dim zero-padded to 128
    bmid_ref: (3, 1, 128)      biases of layers 1-3, zero-padded (f32)
    b4_ref:   (1, out_dim)     layer-4 bias (f32)
    o_ref:    (TB, out_dim)    output tile at logical width
    """
    cdt = w1_ref.dtype  # compute dtype (f32 default, bf16-ingest optional)

    # Layer 1: K = in_dim (no padded-x read traffic).
    h = jnp.dot(x_ref[...], w1_ref[...], preferred_element_type=jnp.float32)
    h = _leaky_relu(h + bmid_ref[0])

    # Layers 2 and 3: 128x128 padded weights (zero pads propagate zeros).
    for l in range(2):
        h = jnp.dot(h.astype(cdt), wmid_ref[l],
                    preferred_element_type=jnp.float32)
        h = _leaky_relu(h + bmid_ref[l + 1])

    # Layer 4: N = out_dim only (no junk lanes, no post-call slice).
    h = jnp.dot(h.astype(cdt), w4_ref[...],
                preferred_element_type=jnp.float32) + b4_ref[...]

    # Sigmoid epilogue: exp on the EUP slot + exact reciprocal (1e-5 tol).
    o_ref[...] = (1.0 / (1.0 + jnp.exp(-h))).astype(o_ref.dtype)


def prepare_params(params, compute_dtype=jnp.float32):
    """One-time packing / zero-padding of the 4 Linear layers.

    params: list of 4 (W_t, b) with W_t in [in, out] layout (transposed from
    torch's [out, in]) and b of shape [out], logical sizes.
    Hoisted out of the per-call path so no pad/stack ops dispatch per call.
    """
    assert len(params) == N_LAYERS
    (w1, b1), (w2, b2), (w3, b3), (w4, b4) = params
    in_dim, out_dim = w1.shape[0], w4.shape[1]
    for w, _ in params:
        assert w.shape[0] <= LANE and w.shape[1] <= LANE
    # TODO(synk): feature dims > 128 would need a K/N-tiled grid instead.

    def pad_w(w, rows, cols):
        return jnp.pad(w.astype(compute_dtype),
                       ((0, rows - w.shape[0]), (0, cols - w.shape[1])))

    def pad_b(b, cols):
        b = b.astype(jnp.float32).reshape(1, -1)
        return jnp.pad(b, ((0, 0), (0, cols - b.shape[-1])))

    w1_p = pad_w(w1, in_dim, LANE)                       # (in_dim, 128)
    wmid = jnp.stack([pad_w(w2, LANE, LANE),
                      pad_w(w3, LANE, LANE)], axis=0)    # (2, 128, 128)
    w4_p = pad_w(w4, LANE, out_dim)                      # (128, out_dim)
    bmid = jnp.stack([pad_b(b1, LANE), pad_b(b2, LANE),
                      pad_b(b3, LANE)], axis=0)          # (3, 1, 128)
    b4_p = b4.astype(jnp.float32).reshape(1, -1)         # (1, out_dim)
    return (w1_p, wmid, w4_p, bmid, b4_p)


@partial(jax.jit, static_argnames=("batch_tile",))
def encoder_forward(x, packed, batch_tile=2048):
    """Fused 4-layer MLP forward.  x: [B, in_dim] f32 (or bf16)."""
    w1_p, wmid, w4_p, bmid, b4_p = packed
    B, in_dim = x.shape
    out_dim = w4_p.shape[1]
    x = x.astype(w1_p.dtype)  # no-op in the default f32 path

    # --- batch tile: large enough to hide per-step overhead; keep >= 2 grid
    #     steps when the batch allows so v7x's two TensorCores both work.
    TB = min(batch_tile, _round_up(B, 8))
    if B > 16:
        TB = min(TB, _round_up(pl.cdiv(B, 2), 8))
    TB = max(TB, 8)
    grid = (pl.cdiv(B, TB),)

    # --- VMEM budget estimate (double-buffered blocks + f32 intermediates).
    itemsize = jnp.dtype(w1_p.dtype).itemsize
    blk_bytes = 2 * TB * (in_dim * itemsize + out_dim * 4)
    interm_bytes = 5 * TB * LANE * 4
    weights_bytes = ((w1_p.size + wmid.size + w4_p.size) * itemsize
                     + (bmid.size + b4_p.size) * 4)
    est = blk_bytes + interm_bytes + 2 * weights_bytes + (1 << 20)
    # Only raise the scoped limit when a big batch_tile would trip v5e's
    # 16 MiB default; cap well under v7x's 64 MiB physical VMEM.
    vmem_limit = min(2 * est, 48 * 1024 * 1024) if est > (16 << 20) else None

    cost = pl.CostEstimate(
        flops=2 * B * (in_dim * LANE + 2 * LANE * LANE + LANE * out_dim),
        transcendentals=B * out_dim,
        bytes_accessed=B * in_dim * itemsize + B * out_dim * 4 + weights_bytes,
    )

    return pl.pallas_call(
        encoder_kernel,
        out_shape=jax.ShapeDtypeStruct((B, out_dim), jnp.float32),
        grid_spec=pltpu.PrefetchScalarGridSpec(
            num_scalar_prefetch=0,
            grid=grid,
            in_specs=[
                # batch tile of x at logical width: pipelined over the grid
                pl.BlockSpec((TB, in_dim), lambda i: (i, 0)),
                # resident weights / biases: same block every step
                pl.BlockSpec((in_dim, LANE), lambda i: (0, 0)),
                pl.BlockSpec((2, LANE, LANE), lambda i: (0, 0, 0)),
                pl.BlockSpec((LANE, out_dim), lambda i: (0, 0)),
                pl.BlockSpec((3, 1, LANE), lambda i: (0, 0, 0)),
                pl.BlockSpec((1, out_dim), lambda i: (0, 0)),
            ],
            out_specs=pl.BlockSpec((TB, out_dim), lambda i: (i, 0)),
        ),
        compiler_params=pltpu.CompilerParams(
            dimension_semantics=("parallel",),   # megacore: shard batch tiles
            vmem_limit_bytes=vmem_limit,
        ),
        cost_estimate=cost,
    )(x, w1_p, wmid, w4_p, bmid, b4_p)


# ----------------------------- init + reference -----------------------------

def xavier_uniform(key, out_features, in_features):
    # Matches torch.nn.init.xavier_uniform_ on a [out, in] weight (gain=1).
    bound = math.sqrt(6.0 / (in_features + out_features))
    return jax.random.uniform(key, (out_features, in_features),
                              dtype=jnp.float32, minval=-bound, maxval=bound)


def make_params(key, input_size, hidden_size):
    dims = [input_size] + list(hidden_size)
    params = []
    keys = jax.random.split(key, len(hidden_size))
    for i in range(len(hidden_size)):
        in_f, out_f = dims[i], dims[i + 1]
        w = xavier_uniform(keys[i], out_f, in_f)      # torch layout [out, in]
        w_t = jnp.transpose(w)                        # kernel layout [in, out]
        b = jnp.zeros((out_f,), dtype=jnp.float32)    # constant_(bias, 0.0)
        params.append((w_t, b))
    return params


def reference_forward(x, params):
    (w1, b1), (w2, b2), (w3, b3), (w4, b4) = params
    h = _leaky_relu(x @ w1 + b1)
    h = _leaky_relu(h @ w2 + b2)
    h = _leaky_relu(h @ w3 + b3)
    return jax.nn.sigmoid(h @ w4 + b4)


if __name__ == "__main__":
    key = jax.random.PRNGKey(0)
    k_x, k_p = jax.random.split(key)

    batch = 8
    input_size = 32
    hidden_size = (64, 48, 32, 16)

    x = jax.random.normal(k_x, (batch, input_size), dtype=jnp.float32)
    params = make_params(k_p, input_size, hidden_size)
    packed = prepare_params(params)          # one-time weight packing

    out = encoder_forward(x, packed)
    out = jax.block_until_ready(out)

    ref = reference_forward(x, params)
    assert out.shape == (batch, hidden_size[-1])
    assert jnp.allclose(out, ref, atol=1e-5, rtol=1e-5)

    print("KERNEL_OK")
</pallas_src>

<mosaic_0001>
module attributes {stable_mosaic.version = 11 : i64} {
  func.func @encoder_kernel(%arg0: i32, %arg1: memref<8x32xf32, #tpu.memory_space<vmem>>, %arg2: memref<32x128xf32, #tpu.memory_space<vmem>>, %arg3: memref<2x128x128xf32, #tpu.memory_space<vmem>>, %arg4: memref<128x16xf32, #tpu.memory_space<vmem>>, %arg5: memref<3x1x128xf32, #tpu.memory_space<vmem>>, %arg6: memref<1x16xf32, #tpu.memory_space<vmem>>, %arg7: memref<8x16xf32, #tpu.memory_space<vmem>>) attributes {dimension_semantics = [#tpu.dimension_semantics<parallel>], iteration_bounds = array<i64: 1>, scalar_prefetch = 0 : i64, scratch_operands = 0 : i64, tpu.core_type = #tpu.core_type<tc>, window_params = [{transform_indices = @transform_0, window_bounds = array<i64: 8, 32>}, {pipeline_mode = #tpu.pipeline_mode<synchronous>, transform_indices = @transform_1, window_bounds = array<i64: 32, 128>}, {pipeline_mode = #tpu.pipeline_mode<synchronous>, transform_indices = @transform_2, window_bounds = array<i64: 2, 128, 128>}, {pipeline_mode = #tpu.pipeline_mode<synchronous>, transform_indices = @transform_3, window_bounds = array<i64: 128, 16>}, {pipeline_mode = #tpu.pipeline_mode<synchronous>, transform_indices = @transform_4, window_bounds = array<i64: 3, 1, 128>}, {pipeline_mode = #tpu.pipeline_mode<synchronous>, transform_indices = @transform_5, window_bounds = array<i64: 1, 16>}, {transform_indices = @transform_6, window_bounds = array<i64: 8, 16>}]} {
    %c0 = arith.constant 0 : index
    %c0_0 = arith.constant 0 : index
    %0 = vector.load %arg1[%c0, %c0_0] : memref<8x32xf32, #tpu.memory_space<vmem>>, vector<8x32xf32>
    %c0_1 = arith.constant 0 : index
    %c0_2 = arith.constant 0 : index
    %1 = vector.load %arg2[%c0_1, %c0_2] : memref<32x128xf32, #tpu.memory_space<vmem>>, vector<32x128xf32>
    %cst = arith.constant dense<0.000000e+00> : vector<8x128xf32>
    %2 = tpu.matmul %0, %1, %cst {dimension_numbers = #tpu.dot_dimension_numbers<[1], [0], [0], [1], [0, 0, 1, 1], [], []>} : vector<8x32xf32>, vector<32x128xf32>, vector<8x128xf32> -> vector<8x128xf32>
    %c0_3 = arith.constant 0 : index
    %c0_4 = arith.constant 0 : index
    %c0_5 = arith.constant 0 : index
    %3 = vector.load %arg5[%c0_3, %c0_4, %c0_5] : memref<3x1x128xf32, #tpu.memory_space<vmem>>, vector<1x1x128xf32>
    %4 = vector.shape_cast %3 : vector<1x1x128xf32> to vector<1x128xf32>
    %5 = vector.broadcast %4 : vector<1x128xf32> to vector<8x128xf32>
    %6 = arith.addf %2, %5 : vector<8x128xf32>
    %cst_6 = arith.constant 0.000000e+00 : f32
    %7 = vector.broadcast %cst_6 : f32 to vector<8x128xf32>
    %8 = arith.cmpf oge, %6, %7 : vector<8x128xf32>
    %cst_7 = arith.constant 4.000000e-01 : f32
    %9 = vector.broadcast %cst_7 : f32 to vector<8x128xf32>
    %10 = arith.mulf %9, %6 : vector<8x128xf32>
    %11 = arith.select %8, %6, %10 : vector<8x128xi1>, vector<8x128xf32>
    %c0_8 = arith.constant 0 : index
    %c0_9 = arith.constant 0 : index
    %c0_10 = arith.constant 0 : index
    %12 = vector.load %arg3[%c0_8, %c0_9, %c0_10] : memref<2x128x128xf32, #tpu.memory_space<vmem>>, vector<1x128x128xf32>
    %13 = vector.shape_cast %12 : vector<1x128x128xf32> to vector<128x128xf32>
    %cst_11 = arith.constant dense<0.000000e+00> : vector<8x128xf32>
    %14 = tpu.matmul %11, %13, %cst_11 {dimension_numbers = #tpu.dot_dimension_numbers<[1], [0], [0], [1], [0, 0, 1, 1], [], []>} : vector<8x128xf32>, vector<128x128xf32>, vector<8x128xf32> -> vector<8x128xf32>
    %c1 = arith.constant 1 : index
    %c0_12 = arith.constant 0 : index
    %c0_13 = arith.constant 0 : index
    %15 = vector.load %arg5[%c1, %c0_12, %c0_13] : memref<3x1x128xf32, #tpu.memory_space<vmem>>, vector<1x1x128xf32>
    %16 = vector.shape_cast %15 : vector<1x1x128xf32> to vector<1x128xf32>
    %17 = vector.broadcast %16 : vector<1x128xf32> to vector<8x128xf32>
    %18 = arith.addf %14, %17 : vector<8x128xf32>
    %cst_14 = arith.constant 0.000000e+00 : f32
    %19 = vector.broadcast %cst_14 : f32 to vector<8x128xf32>
    %20 = arith.cmpf oge, %18, %19 : vector<8x128xf32>
    %cst_15 = arith.constant 4.000000e-01 : f32
    %21 = vector.broadcast %cst_15 : f32 to vector<8x128xf32>
    %22 = arith.mulf %21, %18 : vector<8x128xf32>
    %23 = arith.select %20, %18, %22 : vector<8x128xi1>, vector<8x128xf32>
    %c1_16 = arith.constant 1 : index
    %c0_17 = arith.constant 0 : index
    %c0_18 = arith.constant 0 : index
    %24 = vector.load %arg3[%c1_16, %c0_17, %c0_18] : memref<2x128x128xf32, #tpu.memory_space<vmem>>, vector<1x128x128xf32>
    %25 = vector.shape_cast %24 : vector<1x128x128xf32> to vector<128x128xf32>
    %cst_19 = arith.constant dense<0.000000e+00> : vector<8x128xf32>
    %26 = tpu.matmul %23, %25, %cst_19 {dimension_numbers = #tpu.dot_dimension_numbers<[1], [0], [0], [1], [0, 0, 1, 1], [], []>} : vector<8x128xf32>, vector<128x128xf32>, vector<8x128xf32> -> vector<8x128xf32>
    %c2 = arith.constant 2 : index
    %c0_20 = arith.constant 0 : index
    %c0_21 = arith.constant 0 : index
    %27 = vector.load %arg5[%c2, %c0_20, %c0_21] : memref<3x1x128xf32, #tpu.memory_space<vmem>>, vector<1x1x128xf32>
    %28 = vector.shape_cast %27 : vector<1x1x128xf32> to vector<1x128xf32>
    %29 = vector.broadcast %28 : vector<1x128xf32> to vector<8x128xf32>
    %30 = arith.addf %26, %29 : vector<8x128xf32>
    %cst_22 = arith.constant 0.000000e+00 : f32
    %31 = vector.broadcast %cst_22 : f32 to vector<8x128xf32>
    %32 = arith.cmpf oge, %30, %31 : vector<8x128xf32>
    %cst_23 = arith.constant 4.000000e-01 : f32
    %33 = vector.broadcast %cst_23 : f32 to vector<8x128xf32>
    %34 = arith.mulf %33, %30 : vector<8x128xf32>
    %35 = arith.select %32, %30, %34 : vector<8x128xi1>, vector<8x128xf32>
    %c0_24 = arith.constant 0 : index
    %c0_25 = arith.constant 0 : index
    %36 = vector.load %arg4[%c0_24, %c0_25] : memref<128x16xf32, #tpu.memory_space<vmem>>, vector<128x16xf32>
    %cst_26 = arith.constant dense<0.000000e+00> : vector<8x16xf32>
    %37 = tpu.matmul %35, %36, %cst_26 {dimension_numbers = #tpu.dot_dimension_numbers<[1], [0], [0], [1], [0, 0, 1, 1], [], []>} : vector<8x128xf32>, vector<128x16xf32>, vector<8x16xf32> -> vector<8x16xf32>
    %c0_27 = arith.constant 0 : index
    %c0_28 = arith.constant 0 : index
    %38 = vector.load %arg6[%c0_27, %c0_28] : memref<1x16xf32, #tpu.memory_space<vmem>>, vector<1x16xf32>
    %39 = vector.broadcast %38 : vector<1x16xf32> to vector<8x16xf32>
    %40 = arith.addf %37, %39 : vector<8x16xf32>
    %cst_29 = arith.constant 0.000000e+00 : f32
    %41 = vector.broadcast %cst_29 : f32 to vector<8x16xf32>
    %42 = arith.subf %41, %40 : vector<8x16xf32>
    %43 = math.exp %42 : vector<8x16xf32>
    %cst_30 = arith.constant 1.000000e+00 : f32
    %44 = vector.broadcast %cst_30 : f32 to vector<8x16xf32>
    %45 = arith.addf %44, %43 : vector<8x16xf32>
    %cst_31 = arith.constant 1.000000e+00 : f32
    %46 = vector.broadcast %cst_31 : f32 to vector<8x16xf32>
    %47 = arith.divf %46, %45 : vector<8x16xf32>
    %c0_32 = arith.constant 0 : index
    %c0_33 = arith.constant 0 : index
    %48 = vector.load %arg7[%c0_32, %c0_33] : memref<8x16xf32, #tpu.memory_space<vmem>>, vector<8x16xf32>
    tpu.vector_store %arg7[%c0_32, %c0_33], %47 {strides = array<i32>} : memref<8x16xf32, #tpu.memory_space<vmem>>, vector<8x16xf32>,
    return
  }
  func.func @transform_0(%arg0: i32) -> (i32, i32) {
    %c0_i32 = arith.constant 0 : i32
    %c0_i32_0 = arith.constant 0 : i32
    return %arg0, %c0_i32 : i32, i32
  }
  func.func @transform_1(%arg0: i32) -> (i32, i32) {
    %c0_i32 = arith.constant 0 : i32
    %c0_i32_0 = arith.constant 0 : i32
    %c0_i32_1 = arith.constant 0 : i32
    return %c0_i32, %c0_i32_0 : i32, i32
  }
  func.func @transform_2(%arg0: i32) -> (i32, i32, i32) {
    %c0_i32 = arith.constant 0 : i32
    %c0_i32_0 = arith.constant 0 : i32
    %c0_i32_1 = arith.constant 0 : i32
    %c0_i32_2 = arith.constant 0 : i32
    return %c0_i32, %c0_i32_0, %c0_i32_1 : i32, i32, i32
  }
  func.func @transform_3(%arg0: i32) -> (i32, i32) {
    %c0_i32 = arith.constant 0 : i32
    %c0_i32_0 = arith.constant 0 : i32
    %c0_i32_1 = arith.constant 0 : i32
    return %c0_i32, %c0_i32_0 : i32, i32
  }
  func.func @transform_4(%arg0: i32) -> (i32, i32, i32) {
    %c0_i32 = arith.constant 0 : i32
    %c0_i32_0 = arith.constant 0 : i32
    %c0_i32_1 = arith.constant 0 : i32
    %c0_i32_2 = arith.constant 0 : i32
    return %c0_i32, %c0_i32_0, %c0_i32_1 : i32, i32, i32
  }
  func.func @transform_5(%arg0: i32) -> (i32, i32) {
    %c0_i32 = arith.constant 0 : i32
    %c0_i32_0 = arith.constant 0 : i32
    %c0_i32_1 = arith.constant 0 : i32
    return %c0_i32, %c0_i32_0 : i32, i32
  }
  func.func @transform_6(%arg0: i32) -> (i32, i32) {
    %c0_i32 = arith.constant 0 : i32
    %c0_i32_0 = arith.constant 0 : i32
    return %arg0, %c0_i32 : i32, i32
  }
}

</mosaic_0001>

<bundles_post_ra>
// kernel: encoder_forward.1
= control target key start
LH: loop header
LB: loop body
LE: loop exit
PB: predicated region body
PF: predicated region fallthrough
CT: control target
= control target key end

     0   :  { %11 = vsyncpa [#allocation3], 0  ;;  %s430_s0 = inlined_call_operand.vmem [shape: f32[8,32], index: 0, kind: input, shape index: {}]   ;;  %s431_s1 = inlined_call_operand.vmem [shape: f32[32,128], index: 1, kind: input, shape index: {}]   ;;  %s432_s2 = inlined_call_operand.hbm [shape: f32[2,128,128], index: 2, kind: input, shape index: {}]   ;;  %s433_s3 = inlined_call_operand.vmem [shape: f32[128,16], index: 3, kind: input, shape index: {}]   ;;  %s434_s4 = inlined_call_operand.vmem [shape: f32[3,1,128], index: 4, kind: input, shape index: {}]   ;;  %s435_s5 = inlined_call_operand.vmem [shape: f32[1,16], index: 5, kind: input, shape index: {}]   ;;  %s436_s6 = inlined_call_operand.hbm [shape: f32[8,16], index: 6, kind: output, shape index: {}]  }
   0x1   :  { %12 = vsyncpa [#allocation4], 0  ;;  %s21_s23 = sshll.u32 %s432_s2, 4  ;;  %s310_s24 = smov [#allocation2]   ;;  %s22_s23 = int_to_ptr.hbm [resolvable:$true] %s21_s23 }
   0x2   :  { %s23_s25 = sshll.u32 %s310_s24, 4  ;;  %s311_s26 = smov 128   ;;  %s24_s25 = int_to_ptr.vmem [resolvable:$true] %s23_s25 }
   0x3   :  { %s312_s27 = smov 8  }
   0x4   :  { %29 = dma.hbm_to_vmem [thread:$0]  %s22_s23, 4096, %s24_s25, [#allocation3], %s311_s26, %s311_s26, %s312_s27  }
   0x5   :  { %306 = dma.done.wait [#allocation3], 4096  }
   0x6   :  { %307 = vsyncadd [#allocation3], 4294963200  ;;  %v44_v0 = vld [vmem:[%s431_s1 + $0x18] sm:$0xff]  ;;  %v43_v1 = vld [vmem:[%s431_s1 + $0x10] sm:$0xff]  ;;  %vm49_vm0 = vcmask 261120   ;;  %vm224_vm7 = vcmask 130048  }
   0x7   :  { %65 = vmatpush.msra.mxu0 %v44_v0  ;;  %v91_v2 = vld [vmem:[#allocation2 + $0x78] sm:$0xff]  ;;  %v42_v3 = vld [vmem:[%s431_s1 + $0x8] sm:$0xff]  ;;  %v90_v4 = vld [vmem:[#allocation2 + $0x70] sm:$0xff] }
   0x8   :  { %97 = vmatpush.msra.mxu1 %v91_v2  ;;  %v89_v5 = vld [vmem:[#allocation2 + $0x68] sm:$0xff]  ;;  %v41_v6 = vld [vmem:[%s431_s1] sm:$0xff]  ;;  %v87_v9 = vld [vmem:[#allocation2 + $0x58] sm:$0xff] }
   0x9   :  { %66 = vmatpush.msra.mxu0 %v43_v1  ;;  %v40_v7 = vld [vmem:[%s430_s0] sm:$0xff]  ;;  %v86_v10 = vld [vmem:[#allocation2 + $0x50] sm:$0xff]  ;;  %v85_v11 = vld [vmem:[#allocation2 + $0x48] sm:$0xff] }
   0xa   :  { %98 = vmatpush.msra.mxu1 %v90_v4  ;;  %v88_v8 = vld [vmem:[#allocation2 + $0x60] sm:$0xff]  ;;  %v83_v13 = vld [vmem:[#allocation2 + $0x38] sm:$0xff]  ;;  %v82_v14 = vld [vmem:[#allocation2 + $0x30] sm:$0xff] }
   0xb   :  { %67 = vmatpush.msra.mxu0 %v42_v3  ;;  %v84_v12 = vld [vmem:[#allocation2 + $0x40] sm:$0xff]  ;;  %v81_v15 = vld [vmem:[#allocation2 + $0x28] sm:$0xff]  ;;  %v79_v17 = vld [vmem:[#allocation2 + $0x18] sm:$0xff] }
   0xc   :  { %99 = vmatpush.msra.mxu1 %v89_v5  ;;  %v80_v16 = vld [vmem:[#allocation2 + $0x20] sm:$0xff]  ;;  %v78_v18 = vld [vmem:[#allocation2 + $0x10] sm:$0xff]  ;;  %v77_v19 = vld [vmem:[#allocation2 + $0x8] sm:$0xff] }
   0xd   :  { %68 = vmatpush.msra.mxu0 %v41_v6  ;;  %v76_v20 = vld [vmem:[#allocation2] sm:$0xff]  ;;  %v136_v21 = vld [vmem:[#allocation2 + $0xf8] sm:$0xff]  ;;  %v135_v22 = vld [vmem:[#allocation2 + $0xf0] sm:$0xff] }
   0xe   :  { %243 = vmatmul.msk.f32.vlgmr.msra.gmra.mxu0 %vm49_vm0, %v40_v7  ;;  %100 = vmatpush.msra.mxu1 %v88_v8  ;;  %v134_v23 = vld [vmem:[#allocation2 + $0xe8] sm:$0xff]  ;;  %v133_v24 = vld [vmem:[#allocation2 + $0xe0] sm:$0xff]  ;;  %v132_v25 = vld [vmem:[#allocation2 + $0xd8] sm:$0xff] }
   0xf   :  { %142 = vmatpush.msra.mxu2 %v136_v21  ;;  %v131_v26 = vld [vmem:[#allocation2 + $0xd0] sm:$0xff]  ;;  %v130_v27 = vld [vmem:[#allocation2 + $0xc8] sm:$0xff]  ;;  %v129_v28 = vld [vmem:[#allocation2 + $0xc0] sm:$0xff] }
  0x10   :  { %101 = vmatpush.msra.mxu1 %v87_v9  ;;  %v128_v29 = vld [vmem:[#allocation2 + $0xb8] sm:$0xff]  ;;  %v127_v30 = vld [vmem:[#allocation2 + $0xb0] sm:$0xff]  ;;  %v126_v31 = vld [vmem:[#allocation2 + $0xa8] sm:$0xff] }
  0x11   :  { %143 = vmatpush.msra.mxu2 %v135_v22  ;;  %v125_v32 = vld [vmem:[#allocation2 + $0xa0] sm:$0xff]  ;;  %v124_v33 = vld [vmem:[#allocation2 + $0x98] sm:$0xff]  ;;  %v123_v39 = vld [vmem:[#allocation2 + $0x90] sm:$0xff] }
  0x12   :  { %102 = vmatpush.msra.mxu1 %v86_v10  ;;  %v250_v34 = vld [vmem:[%s434_s4] ss:$0 sm:$0xff]  ;;  %v122_v40 = vld [vmem:[#allocation2 + $0x88] sm:$0xff]  ;;  %v180_v42 = vld [vmem:[%s433_s3 + $0x78] sm:$0xff] }
  0x13   :  { %144 = vmatpush.msra.mxu2 %v134_v23  ;;  %v121_v41 = vld [vmem:[#allocation2 + $0x80] sm:$0xff]  ;;  %v179_v43 = vld [vmem:[%s433_s3 + $0x70] sm:$0xff]  ;;  %185 = vmatpush.msra.mxu3 %v180_v42  ;;  %v178_v44 = vld [vmem:[%s433_s3 + $0x68] sm:$0xff] }
  0x14   :  { %103 = vmatpush.msra.mxu1 %v85_v11  ;;  %v177_v45 = vld [vmem:[%s433_s3 + $0x60] sm:$0xff]  ;;  %v176_v46 = vld [vmem:[%s433_s3 + $0x58] sm:$0xff]  ;;  %v175_v47 = vld [vmem:[%s433_s3 + $0x50] sm:$0xff] }
  0x15   :  { %145 = vmatpush.msra.mxu2 %v133_v24  ;;  %186 = vmatpush.msra.mxu3 %v179_v43  ;;  %v174_v48 = vld [vmem:[%s433_s3 + $0x48] sm:$0xff]  ;;  %v173_v49 = vld [vmem:[%s433_s3 + $0x40] sm:$0xff]  ;;  %v172_v50 = vld [vmem:[%s433_s3 + $0x38] sm:$0xff] }
  0x16   :  { %104 = vmatpush.msra.mxu1 %v84_v12  ;;  %v171_v51 = vld [vmem:[%s433_s3 + $0x30] sm:$0xff]  ;;  %v170_v52 = vld [vmem:[%s433_s3 + $0x28] sm:$0xff]  ;;  %v169_v53 = vld [vmem:[%s433_s3 + $0x20] sm:$0xff] }
  0x17   :  { %146 = vmatpush.msra.mxu2 %v132_v25  ;;  %187 = vmatpush.msra.mxu3 %v178_v44  ;;  %v168_v54 = vld [vmem:[%s433_s3 + $0x18] sm:$0xff]  ;;  %v251_v55 = vld [vmem:[%s434_s4 + $0x1] ss:$0 sm:$0xff]  ;;  %v167_v60 = vld [vmem:[%s433_s3 + $0x10] sm:$0xff] }
  0x18   :  { %105 = vmatpush.msra.mxu1 %v83_v13  ;;  %v166_v61 = vld [vmem:[%s433_s3 + $0x8] sm:$0xff]  ;;  %v165_v62 = vld [vmem:[%s433_s3] sm:$0xff]  ;;  %s313_s3 = smov [#allocation5]  }
  0x19   :  { %147 = vmatpush.msra.mxu2 %v131_v26  ;;  %188 = vmatpush.msra.mxu3 %v177_v45  ;;  %v252_v63 = vld [vmem:[%s434_s4 + $0x2] ss:$0 sm:$0xff]  ;;  %v253_v4 = vld [vmem:[%s435_s5] ss:$0 sm:$0xff]  ;;  %s231_s4 = sshll.u32 %s313_s3, 4  ;;  %s233_s5 = sshll.u32 %s436_s6, 4  ;;  %s232_s4 = int_to_ptr.vmem [resolvable:$true] %s231_s4  ;;  %s234_s5 = int_to_ptr.hbm [resolvable:$true] %s233_s5 }
  0x1a   :  { %106 = vmatpush.msra.mxu1 %v82_v14 }
  0x1b   :  { %148 = vmatpush.msra.mxu2 %v130_v27  ;;  %189 = vmatpush.msra.mxu3 %v176_v46 }
  0x1c   :  { %107 = vmatpush.msra.mxu1 %v81_v15 }
  0x1d   :  { %149 = vmatpush.msra.mxu2 %v129_v28  ;;  %190 = vmatpush.msra.mxu3 %v175_v47 }
  0x1e   :  { %108 = vmatpush.msra.mxu1 %v80_v16 }
  0x1f   :  { %150 = vmatpush.msra.mxu2 %v128_v29  ;;  %191 = vmatpush.msra.mxu3 %v174_v48 }
  0x20   :  { %109 = vmatpush.msra.mxu1 %v79_v17 }
  0x21   :  { %151 = vmatpush.msra.mxu2 %v127_v30  ;;  %192 = vmatpush.msra.mxu3 %v173_v49 }
  0x22   :  { %110 = vmatpush.msra.mxu1 %v78_v18 }
  0x23   :  { %152 = vmatpush.msra.mxu2 %v126_v31  ;;  %193 = vmatpush.msra.mxu3 %v172_v50 }
  0x24   :  { %111 = vmatpush.msra.mxu1 %v77_v19 }
  0x25   :  { %153 = vmatpush.msra.mxu2 %v125_v32  ;;  %194 = vmatpush.msra.mxu3 %v171_v51 }
  0x26   :  { %112 = vmatpush.msra.mxu1 %v76_v20 }
  0x27   :  { %154 = vmatpush.msra.mxu2 %v124_v33  ;;  %195 = vmatpush.msra.mxu3 %v170_v52 }
  0x29   :  { %155 = vmatpush.msra.mxu2 %v123_v39  ;;  %196 = vmatpush.msra.mxu3 %v169_v53 }
  0x2b   :  { %156 = vmatpush.msra.mxu2 %v122_v40  ;;  %197 = vmatpush.msra.mxu3 %v168_v54 }
  0x2d   :  { %157 = vmatpush.msra.mxu2 %v121_v41  ;;  %198 = vmatpush.msra.mxu3 %v167_v60 }
  0x2f   :  { %199 = vmatpush.msra.mxu3 %v166_v61 }
  0x31   :  { %200 = vmatpush.msra.mxu3 %v165_v62 }
  0x8b   :  { %v70_v35 = vpop.f32.mrf.mxu0 }
  0x8c   :  { %v71_v36 = vadd.f32 %v250_v34, %v70_v35 }
  0x8e   :  { %vm73_vm1 = vcmp.ge.f32.partialorder %v71_v36, 0.0  ;;  %v74_v37 = vmul.f32 0.4, %v71_v36 }
  0x90   :  { %v75_v38 = vsel %vm73_vm1, %v71_v36, %v74_v37 }
  0x91   :  { %113 = vmatmul.f32.vlgmr.msra.gmra.mxu1 %v75_v38 }
 0x10e   :  { %v114_v56 = vpop.f32.mrf.mxu1 }
 0x10f   :  { %v115_v57 = vadd.f32 %v251_v55, %v114_v56 }
 0x111   :  { %vm117_vm2 = vcmp.ge.f32.partialorder %v115_v57, 0.0  ;;  %v118_v58 = vmul.f32 0.4, %v115_v57 }
 0x113   :  { %v119_v59 = vsel %vm117_vm2, %v115_v57, %v118_v58 }
 0x114   :  { %158 = vmatmul.f32.vlgmr.msra.gmra.mxu2 %v119_v59 }
 0x197   :  { %v159_v0 = vpop.f32.mrf.mxu2 }
 0x198   :  { %v160_v1 = vadd.f32 %v252_v63, %v159_v0 }
 0x19a   :  { %vm162_vm3 = vcmp.ge.f32.partialorder %v160_v1, 0.0  ;;  %v163_v2 = vmul.f32 0.4, %v160_v1 }
 0x19c   :  { %v164_v3 = vsel %vm162_vm3, %v160_v1, %v163_v2 }
 0x19d   :  { %201 = vmatmul.f32.vlgmr.msra.gmra.mxu3 %v164_v3 }
 0x220   :  { %v202_v5 = vpop.f32.mrf.mxu3 }
 0x221   :  { %v203_v6 = vadd.f32 %v253_v4, %v202_v5 }
 0x223   :  { %v205_v7 = vsub.f32 0.0, %v203_v6 }
 0x225   :  { %v206_v8 = vmul.f32 1.442695, %v205_v7 }
 0x227   :  { %254 = vpow2.f32 %v206_v8 }
 0x22d   :  { %v255_v9 = vpop.eup %254 }
 0x22e   :  { %v208_v10 = vadd.f32 1.0, %v255_v9 }
 0x230   :  { %256 = vrcp.f32 %v208_v10  ;;  %v220_v14 = vand.u32 2147483648, %v208_v10  ;;  %v218_v16 = vand.u32 2147483647, %v208_v10  ;;  %vm214_vm5 = vweird.f32 %v208_v10 }
 0x232   :  { %v221_v18 = vor.u32 1.1754944e-38, %v220_v14  ;;  %vm219_vm8 = vcmp.eq.f32.partialorder %v218_v16, 8.507059e+37 }
 0x236   :  { %v257_v11 = vpop.eup %256 }
 0x237   :  { %v210_v12 = vmul.f32 %v257_v11, %v208_v10  ;;  %vm215_vm4 = vweird.f32 %v257_v11 }
 0x238   :  { %vm216_vm6 = vmor %vm214_vm5, %vm215_vm4 }
 0x239   :  { %v211_v13 = vsub.f32 1.0, %v210_v12 }
 0x23b   :  { %v212_v15 = vmul.f32 %v257_v11, %v211_v13 }
 0x23d   :  { %v213_v17 = vadd.f32 %v257_v11, %v212_v15 }
 0x23f   :  { %v217_v19 = vsel %vm216_vm6, %v257_v11, %v213_v17 }
 0x240   :  { %v222_v20 = vsel %vm219_vm8, %v221_v18, %v217_v19 }
 0x241   :  { %225 = vst.msk [vmem:[#allocation5] sm:$0xff] %vm224_vm7, %v222_v20 }
 0x242   :  { %236 = dma.vmem_to_hbm [thread:$0]  %s232_s4, 128, %s234_s5, [#allocation4]  }
 0x243   :  { %308 = dma.done.wait [#allocation4], 128  }
 0x244   :  { %309 = vsyncadd [#allocation4], 4294967168 }
 0x245   :  { %241 = vsyncpa [#allocation3], 1 }
 0x246   :  { %242 = vsyncpa [#allocation4], 1 }

</bundles_post_ra>
